<compile_context>
chip_gen: v7x
topology: tpu7x:2x2x1
jax: 0.10.0
libtpu: 0.0.40
codegen_flags: <defaults>
</compile_context>

<pallas_src>
import functools

import jax
import jax.numpy as jnp
from jax import lax
from jax.experimental import pallas as pl
from jax.experimental.pallas import tpu as pltpu


# ---------------------------------------------------------------------------
# Phase 1 (parallel): input projection  pre = x @ W_x + b   over all T*B rows.
# ---------------------------------------------------------------------------
def x_projection_kernel(x_ref, wx_ref, b_ref, pre_ref):
    # x_ref: [R, I], wx_ref: [I, H+O], b_ref: [1, H+O], pre_ref: [R, H+O]
    pre_ref[...] = (
        jnp.dot(x_ref[...], wx_ref[...], preferred_element_type=jnp.float32)
        + b_ref[...]
    )


# ---------------------------------------------------------------------------
# Phase 2 (serial): recurrence, Tc timesteps per grid step.
# ---------------------------------------------------------------------------
def rnn_recurrence_kernel(pre_ref, h0_ref, whh_ref, out_ref, hfin_ref, h_carry):
    """One grid step == one chunk of Tc RNN timesteps.

    pre_ref:  [Tc, B, H+O]  precomputed x_t @ W_x + b for this chunk
    h0_ref:   [B, H]        initial hidden state (read only at chunk 0)
    whh_ref:  [H, H+O]      recurrent weights (resident in VMEM)
    out_ref:  [Tc, B, O]    per-step log-softmax outputs for this chunk
    hfin_ref: [B, H]        final hidden state (written only at last chunk)
    h_carry:  [B, H] f32    VMEM scratch carrying the hidden across chunks
    """
    c = pl.program_id(0)
    n_chunks = pl.num_programs(0)
    Tc = pre_ref.shape[0]
    H = h0_ref.shape[-1]

    @pl.when(c == 0)
    def _():
        h_carry[...] = h0_ref[...]

    whh = whh_ref[...]          # hoisted: loaded once per chunk
    h_init = h_carry[...]

    def step(t, h):
        # res = [h_t | x_t] @ [W_hh | W_x].T + b  ==  h_t @ W_hh + pre[t]
        res = jnp.dot(h, whh, preferred_element_type=jnp.float32) + pre_ref[t]
        out_ref[t] = res[:, H:]          # stage raw logits (VMEM only)
        return res[:, :H]                # hidden carried in vregs

    h_last = lax.fori_loop(0, Tc, step, h_init, unroll=True)

    # Chunk-vectorized, numerically stable log-softmax (off the serial path);
    # one HBM writeback per chunk instead of per step.
    logits = out_ref[...]
    m = jnp.max(logits, axis=-1, keepdims=True)
    shifted = logits - m
    lse = jnp.log(jnp.sum(jnp.exp(shifted), axis=-1, keepdims=True))
    out_ref[...] = shifted - lse

    h_carry[...] = h_last

    @pl.when(c == n_chunks - 1)
    def _():
        hfin_ref[...] = h_last


# ---------------------------------------------------------------------------
# Parameter packing + wrappers
# ---------------------------------------------------------------------------
def pack_params(W_h, b_h, W_o, b_o, input_size, dtype=jnp.float32):
    """Split/pack the two nn.Linear layers for the two-phase kernel.

    W_h: [H, I+H], W_o: [O, I+H]  ->
      W_x:  [I, H+O]  (input part,   used in the parallel precompute)
      W_hh: [H, H+O]  (recurrent part, stays on the serial path)
      b:    [1, H+O]  (folded into the precompute)
    Columns [:H] produce the new hidden state, columns [H:] the logits.
    """
    W = jnp.concatenate([W_h, W_o], axis=0)                 # [H+O, I+H]
    Wx = W[:, :input_size].T.astype(dtype)                  # [I, H+O]
    Whh = W[:, input_size:].T.astype(dtype)                 # [H, H+O]
    b = jnp.concatenate([b_h, b_o]).reshape(1, -1).astype(jnp.float32)
    return Wx, Whh, b


def rnn_forward_sequence(xs, h0, Wx, Whh, b_packed, time_chunk=8):
    """Run the RNN cell over a whole sequence.

    xs: [T, B, I], h0: [B, H]
    returns (log_softmax outputs [T, B, O], final hidden [B, H])
    """
    T, B, I = xs.shape
    H = h0.shape[1]
    HO = Whh.shape[1]
    O = HO - H

    # ---- Phase 1: parallel input projection over all T*B rows -------------
    rows = T * B
    xs_flat = xs.reshape(rows, I)
    row_tile = rows
    for cand in (512, 256, 128):
        if rows >= cand and rows % cand == 0:
            row_tile = cand
            break

    pre_flat = pl.pallas_call(
        x_projection_kernel,
        out_shape=jax.ShapeDtypeStruct((rows, HO), jnp.float32),
        grid_spec=pltpu.PrefetchScalarGridSpec(
            num_scalar_prefetch=0,
            grid=(rows // row_tile,),
            in_specs=[
                pl.BlockSpec((row_tile, I), lambda r: (r, 0)),
                pl.BlockSpec((I, HO), lambda r: (0, 0)),      # W_x resident
                pl.BlockSpec((1, HO), lambda r: (0, 0)),      # bias resident
            ],
            out_specs=pl.BlockSpec((row_tile, HO), lambda r: (r, 0)),
        ),
        compiler_params=pltpu.CompilerParams(
            dimension_semantics=("parallel",),
        ),
    )(xs_flat, Wx, b_packed)
    pre = pre_flat.reshape(T, B, HO)

    # ---- Phase 2: serial recurrence, Tc timesteps per grid step -----------
    Tc = min(time_chunk, T)
    while T % Tc:            # largest divisor of T that is <= time_chunk
        Tc -= 1

    out, hfin = pl.pallas_call(
        rnn_recurrence_kernel,
        out_shape=(
            jax.ShapeDtypeStruct((T, B, O), jnp.float32),
            jax.ShapeDtypeStruct((B, H), jnp.float32),
        ),
        grid_spec=pltpu.PrefetchScalarGridSpec(
            num_scalar_prefetch=0,
            grid=(T // Tc,),
            in_specs=[
                pl.BlockSpec((Tc, B, HO), lambda c: (c, 0, 0)),  # pre streamed
                pl.BlockSpec((B, H), lambda c: (0, 0)),          # h0 resident
                pl.BlockSpec((H, HO), lambda c: (0, 0)),         # W_hh resident
            ],
            out_specs=(
                pl.BlockSpec((Tc, B, O), lambda c: (c, 0, 0)),   # per-chunk out
                pl.BlockSpec((B, H), lambda c: (0, 0)),          # final hidden
            ),
            scratch_shapes=[pltpu.VMEM((B, H), jnp.float32)],    # hidden carry
        ),
        compiler_params=pltpu.CompilerParams(
            dimension_semantics=("arbitrary",),   # true recurrence
            vmem_limit_bytes=32 * 1024 * 1024,    # fits v7x's 64 MiB with room
        ),
    )(pre, h0, Whh)
    return out, hfin


def rnn_forward(x, h, Wx, Whh, b_packed):
    """Single-step API matching the PyTorch forward(input_, hidden)."""
    out, hid = rnn_forward_sequence(x[None], h, Wx, Whh, b_packed, time_chunk=1)
    return out[0], hid


def init_params(key, input_size, hidden_size, output_size):
    """Deterministic init mimicking nn.Linear's uniform(-1/sqrt(fan_in), +...)."""
    k1, k2, k3, k4 = jax.random.split(key, 4)
    fan_in = input_size + hidden_size
    bound = 1.0 / jnp.sqrt(jnp.float32(fan_in))
    W_h = jax.random.uniform(k1, (hidden_size, fan_in), jnp.float32, -bound, bound)
    b_h = jax.random.uniform(k2, (hidden_size,), jnp.float32, -bound, bound)
    W_o = jax.random.uniform(k3, (output_size, fan_in), jnp.float32, -bound, bound)
    b_o = jax.random.uniform(k4, (output_size,), jnp.float32, -bound, bound)
    return W_h, b_h, W_o, b_o


if __name__ == "__main__":
    input_size, hidden_size, output_size = 16, 32, 8
    batch, seq_len = 8, 16                      # grid = (2,) chunks of 8 steps

    key = jax.random.PRNGKey(0)
    kp, kx = jax.random.split(key)
    W_h, b_h, W_o, b_o = init_params(kp, input_size, hidden_size, output_size)
    Wx, Whh, b_packed = pack_params(W_h, b_h, W_o, b_o, input_size)

    xs = jax.random.normal(kx, (seq_len, batch, input_size), jnp.float32)
    h0 = jnp.zeros((batch, hidden_size), jnp.float32)   # RNN.init_hidden() analog

    seq_fn = jax.jit(functools.partial(rnn_forward_sequence, time_chunk=8))
    outs, h_final = seq_fn(xs, h0, Wx, Whh, b_packed)
    jax.block_until_ready((outs, h_final))

    # Pure-JAX reference (high-precision matmuls) over the same sequence.
    hp = jax.lax.Precision.HIGHEST

    def ref_step(h, x):
        combined = jnp.concatenate([x, h], axis=1)
        h_new = jnp.dot(combined, W_h.T, precision=hp) + b_h
        logits = jnp.dot(combined, W_o.T, precision=hp) + b_o
        return h_new, jax.nn.log_softmax(logits, axis=1)

    ref_h_final, ref_outs = jax.lax.scan(ref_step, h0, xs)

    assert jnp.allclose(outs, ref_outs, atol=2e-4, rtol=2e-4), "log_softmax output mismatch"
    assert jnp.allclose(h_final, ref_h_final, atol=2e-4, rtol=2e-4), "hidden state mismatch"

    # Also exercise the single-step API (matches PyTorch forward signature).
    out1, h1 = rnn_forward(xs[0], h0, Wx, Whh, b_packed)
    jax.block_until_ready((out1, h1))
    assert jnp.allclose(out1, ref_outs[0], atol=2e-4, rtol=2e-4)
    assert jnp.allclose(h1, ref_h_final if seq_len == 1 else (jnp.dot(
        jnp.concatenate([xs[0], h0], axis=1), W_h.T, precision=hp) + b_h),
        atol=2e-4, rtol=2e-4)

    print("KERNEL_OK")
</pallas_src>

<mosaic_0001>
module attributes {stable_mosaic.version = 11 : i64} {
  func.func @rnn_recurrence_kernel(%arg0: i32, %arg1: memref<8x8x40xf32, #tpu.memory_space<vmem>>, %arg2: memref<8x32xf32, #tpu.memory_space<vmem>>, %arg3: memref<32x40xf32, #tpu.memory_space<vmem>>, %arg4: memref<8x8x8xf32, #tpu.memory_space<vmem>>, %arg5: memref<8x32xf32, #tpu.memory_space<vmem>>, %arg6: memref<8x32xf32, #tpu.memory_space<vmem>>) attributes {dimension_semantics = [#tpu.dimension_semantics<arbitrary>], iteration_bounds = array<i64: 2>, scalar_prefetch = 0 : i64, scratch_operands = 1 : i64, tpu.core_type = #tpu.core_type<tc>, window_params = [{transform_indices = @transform_0, window_bounds = array<i64: 8, 8, 40>}, {pipeline_mode = #tpu.pipeline_mode<synchronous>, transform_indices = @transform_1, window_bounds = array<i64: 8, 32>}, {pipeline_mode = #tpu.pipeline_mode<synchronous>, transform_indices = @transform_2, window_bounds = array<i64: 32, 40>}, {transform_indices = @transform_3, window_bounds = array<i64: 8, 8, 8>}, {pipeline_mode = #tpu.pipeline_mode<synchronous>, transform_indices = @transform_4, window_bounds = array<i64: 8, 32>}]} {
    %c0_i32 = arith.constant 0 : i32
    %0 = arith.cmpi eq, %arg0, %c0_i32 : i32
    %1 = arith.extui %0 : i1 to i32
    %c0_i32_0 = arith.constant 0 : i32
    %2 = arith.cmpi ne, %1, %c0_i32_0 : i32
    scf.if %2 {
      %c0_56 = arith.constant 0 : index
      %c0_57 = arith.constant 0 : index
      %109 = vector.load %arg2[%c0_56, %c0_57] : memref<8x32xf32, #tpu.memory_space<vmem>>, vector<8x32xf32>
      %c0_58 = arith.constant 0 : index
      %c0_59 = arith.constant 0 : index
      %110 = vector.load %arg6[%c0_58, %c0_59] : memref<8x32xf32, #tpu.memory_space<vmem>>, vector<8x32xf32>
      tpu.vector_store %arg6[%c0_58, %c0_59], %109 {strides = array<i32>} : memref<8x32xf32, #tpu.memory_space<vmem>>, vector<8x32xf32>,
    } else {
    }
    %c0 = arith.constant 0 : index
    %c0_1 = arith.constant 0 : index
    %3 = vector.load %arg3[%c0, %c0_1] : memref<32x40xf32, #tpu.memory_space<vmem>>, vector<32x40xf32>
    %c0_2 = arith.constant 0 : index
    %c0_3 = arith.constant 0 : index
    %4 = vector.load %arg6[%c0_2, %c0_3] : memref<8x32xf32, #tpu.memory_space<vmem>>, vector<8x32xf32>
    %c0_i32_4 = arith.constant 0 : i32
    %cst = arith.constant dense<0.000000e+00> : vector<8x40xf32>
    %5 = tpu.matmul %4, %3, %cst {dimension_numbers = #tpu.dot_dimension_numbers<[1], [0], [0], [1], [0, 0, 1, 1], [], []>} : vector<8x32xf32>, vector<32x40xf32>, vector<8x40xf32> -> vector<8x40xf32>
    %6 = arith.index_cast %c0_i32_4 : i32 to index
    %c0_5 = arith.constant 0 : index
    %c0_6 = arith.constant 0 : index
    %7 = vector.load %arg1[%6, %c0_5, %c0_6] : memref<8x8x40xf32, #tpu.memory_space<vmem>>, vector<1x8x40xf32>
    %8 = vector.shape_cast %7 : vector<1x8x40xf32> to vector<8x40xf32>
    %9 = arith.addf %5, %8 : vector<8x40xf32>
    %10 = vector.extract_strided_slice %9 {offsets = [0, 32], sizes = [8, 8], strides = [1, 1]} : vector<8x40xf32> to vector<8x8xf32>
    %11 = arith.index_cast %c0_i32_4 : i32 to index
    %c0_7 = arith.constant 0 : index
    %c0_8 = arith.constant 0 : index
    %12 = vector.load %arg4[%11, %c0_7, %c0_8] : memref<8x8x8xf32, #tpu.memory_space<vmem>>, vector<1x8x8xf32>
    %13 = vector.shape_cast %12 : vector<1x8x8xf32> to vector<8x8xf32>
    %14 = vector.shape_cast %10 : vector<8x8xf32> to vector<1x8x8xf32>
    tpu.vector_store %arg4[%11, %c0_7, %c0_8], %14 {strides = array<i32>} : memref<8x8x8xf32, #tpu.memory_space<vmem>>, vector<1x8x8xf32>,
    %15 = vector.extract_strided_slice %9 {offsets = [0, 0], sizes = [8, 32], strides = [1, 1]} : vector<8x40xf32> to vector<8x32xf32>
    %c1_i32 = arith.constant 1 : i32
    %cst_9 = arith.constant dense<0.000000e+00> : vector<8x40xf32>
    %16 = tpu.matmul %15, %3, %cst_9 {dimension_numbers = #tpu.dot_dimension_numbers<[1], [0], [0], [1], [0, 0, 1, 1], [], []>} : vector<8x32xf32>, vector<32x40xf32>, vector<8x40xf32> -> vector<8x40xf32>
    %17 = arith.index_cast %c1_i32 : i32 to index
    %c0_10 = arith.constant 0 : index
    %c0_11 = arith.constant 0 : index
    %18 = vector.load %arg1[%17, %c0_10, %c0_11] : memref<8x8x40xf32, #tpu.memory_space<vmem>>, vector<1x8x40xf32>
    %19 = vector.shape_cast %18 : vector<1x8x40xf32> to vector<8x40xf32>
    %20 = arith.addf %16, %19 : vector<8x40xf32>
    %21 = vector.extract_strided_slice %20 {offsets = [0, 32], sizes = [8, 8], strides = [1, 1]} : vector<8x40xf32> to vector<8x8xf32>
    %22 = arith.index_cast %c1_i32 : i32 to index
    %c0_12 = arith.constant 0 : index
    %c0_13 = arith.constant 0 : index
    %23 = vector.load %arg4[%22, %c0_12, %c0_13] : memref<8x8x8xf32, #tpu.memory_space<vmem>>, vector<1x8x8xf32>
    %24 = vector.shape_cast %23 : vector<1x8x8xf32> to vector<8x8xf32>
    %25 = vector.shape_cast %21 : vector<8x8xf32> to vector<1x8x8xf32>
    tpu.vector_store %arg4[%22, %c0_12, %c0_13], %25 {strides = array<i32>} : memref<8x8x8xf32, #tpu.memory_space<vmem>>, vector<1x8x8xf32>,
    %26 = vector.extract_strided_slice %20 {offsets = [0, 0], sizes = [8, 32], strides = [1, 1]} : vector<8x40xf32> to vector<8x32xf32>
    %c2_i32 = arith.constant 2 : i32
    %cst_14 = arith.constant dense<0.000000e+00> : vector<8x40xf32>
    %27 = tpu.matmul %26, %3, %cst_14 {dimension_numbers = #tpu.dot_dimension_numbers<[1], [0], [0], [1], [0, 0, 1, 1], [], []>} : vector<8x32xf32>, vector<32x40xf32>, vector<8x40xf32> -> vector<8x40xf32>
    %28 = arith.index_cast %c2_i32 : i32 to index
    %c0_15 = arith.constant 0 : index
    %c0_16 = arith.constant 0 : index
    %29 = vector.load %arg1[%28, %c0_15, %c0_16] : memref<8x8x40xf32, #tpu.memory_space<vmem>>, vector<1x8x40xf32>
    %30 = vector.shape_cast %29 : vector<1x8x40xf32> to vector<8x40xf32>
    %31 = arith.addf %27, %30 : vector<8x40xf32>
    %32 = vector.extract_strided_slice %31 {offsets = [0, 32], sizes = [8, 8], strides = [1, 1]} : vector<8x40xf32> to vector<8x8xf32>
    %33 = arith.index_cast %c2_i32 : i32 to index
    %c0_17 = arith.constant 0 : index
    %c0_18 = arith.constant 0 : index
    %34 = vector.load %arg4[%33, %c0_17, %c0_18] : memref<8x8x8xf32, #tpu.memory_space<vmem>>, vector<1x8x8xf32>
    %35 = vector.shape_cast %34 : vector<1x8x8xf32> to vector<8x8xf32>
    %36 = vector.shape_cast %32 : vector<8x8xf32> to vector<1x8x8xf32>
    tpu.vector_store %arg4[%33, %c0_17, %c0_18], %36 {strides = array<i32>} : memref<8x8x8xf32, #tpu.memory_space<vmem>>, vector<1x8x8xf32>,
    %37 = vector.extract_strided_slice %31 {offsets = [0, 0], sizes = [8, 32], strides = [1, 1]} : vector<8x40xf32> to vector<8x32xf32>
    %c3_i32 = arith.constant 3 : i32
    %cst_19 = arith.constant dense<0.000000e+00> : vector<8x40xf32>
    %38 = tpu.matmul %37, %3, %cst_19 {dimension_numbers = #tpu.dot_dimension_numbers<[1], [0], [0], [1], [0, 0, 1, 1], [], []>} : vector<8x32xf32>, vector<32x40xf32>, vector<8x40xf32> -> vector<8x40xf32>
    %39 = arith.index_cast %c3_i32 : i32 to index
    %c0_20 = arith.constant 0 : index
    %c0_21 = arith.constant 0 : index
    %40 = vector.load %arg1[%39, %c0_20, %c0_21] : memref<8x8x40xf32, #tpu.memory_space<vmem>>, vector<1x8x40xf32>
    %41 = vector.shape_cast %40 : vector<1x8x40xf32> to vector<8x40xf32>
    %42 = arith.addf %38, %41 : vector<8x40xf32>
    %43 = vector.extract_strided_slice %42 {offsets = [0, 32], sizes = [8, 8], strides = [1, 1]} : vector<8x40xf32> to vector<8x8xf32>
    %44 = arith.index_cast %c3_i32 : i32 to index
    %c0_22 = arith.constant 0 : index
    %c0_23 = arith.constant 0 : index
    %45 = vector.load %arg4[%44, %c0_22, %c0_23] : memref<8x8x8xf32, #tpu.memory_space<vmem>>, vector<1x8x8xf32>
    %46 = vector.shape_cast %45 : vector<1x8x8xf32> to vector<8x8xf32>
    %47 = vector.shape_cast %43 : vector<8x8xf32> to vector<1x8x8xf32>
    tpu.vector_store %arg4[%44, %c0_22, %c0_23], %47 {strides = array<i32>} : memref<8x8x8xf32, #tpu.memory_space<vmem>>, vector<1x8x8xf32>,
    %48 = vector.extract_strided_slice %42 {offsets = [0, 0], sizes = [8, 32], strides = [1, 1]} : vector<8x40xf32> to vector<8x32xf32>
    %c4_i32 = arith.constant 4 : i32
    %cst_24 = arith.constant dense<0.000000e+00> : vector<8x40xf32>
    %49 = tpu.matmul %48, %3, %cst_24 {dimension_numbers = #tpu.dot_dimension_numbers<[1], [0], [0], [1], [0, 0, 1, 1], [], []>} : vector<8x32xf32>, vector<32x40xf32>, vector<8x40xf32> -> vector<8x40xf32>
    %50 = arith.index_cast %c4_i32 : i32 to index
    %c0_25 = arith.constant 0 : index
    %c0_26 = arith.constant 0 : index
    %51 = vector.load %arg1[%50, %c0_25, %c0_26] : memref<8x8x40xf32, #tpu.memory_space<vmem>>, vector<1x8x40xf32>
    %52 = vector.shape_cast %51 : vector<1x8x40xf32> to vector<8x40xf32>
    %53 = arith.addf %49, %52 : vector<8x40xf32>
    %54 = vector.extract_strided_slice %53 {offsets = [0, 32], sizes = [8, 8], strides = [1, 1]} : vector<8x40xf32> to vector<8x8xf32>
    %55 = arith.index_cast %c4_i32 : i32 to index
    %c0_27 = arith.constant 0 : index
    %c0_28 = arith.constant 0 : index
    %56 = vector.load %arg4[%55, %c0_27, %c0_28] : memref<8x8x8xf32, #tpu.memory_space<vmem>>, vector<1x8x8xf32>
    %57 = vector.shape_cast %56 : vector<1x8x8xf32> to vector<8x8xf32>
    %58 = vector.shape_cast %54 : vector<8x8xf32> to vector<1x8x8xf32>
    tpu.vector_store %arg4[%55, %c0_27, %c0_28], %58 {strides = array<i32>} : memref<8x8x8xf32, #tpu.memory_space<vmem>>, vector<1x8x8xf32>,
    %59 = vector.extract_strided_slice %53 {offsets = [0, 0], sizes = [8, 32], strides = [1, 1]} : vector<8x40xf32> to vector<8x32xf32>
    %c5_i32 = arith.constant 5 : i32
    %cst_29 = arith.constant dense<0.000000e+00> : vector<8x40xf32>
    %60 = tpu.matmul %59, %3, %cst_29 {dimension_numbers = #tpu.dot_dimension_numbers<[1], [0], [0], [1], [0, 0, 1, 1], [], []>} : vector<8x32xf32>, vector<32x40xf32>, vector<8x40xf32> -> vector<8x40xf32>
    %61 = arith.index_cast %c5_i32 : i32 to index
    %c0_30 = arith.constant 0 : index
    %c0_31 = arith.constant 0 : index
    %62 = vector.load %arg1[%61, %c0_30, %c0_31] : memref<8x8x40xf32, #tpu.memory_space<vmem>>, vector<1x8x40xf32>
    %63 = vector.shape_cast %62 : vector<1x8x40xf32> to vector<8x40xf32>
    %64 = arith.addf %60, %63 : vector<8x40xf32>
    %65 = vector.extract_strided_slice %64 {offsets = [0, 32], sizes = [8, 8], strides = [1, 1]} : vector<8x40xf32> to vector<8x8xf32>
    %66 = arith.index_cast %c5_i32 : i32 to index
    %c0_32 = arith.constant 0 : index
    %c0_33 = arith.constant 0 : index
    %67 = vector.load %arg4[%66, %c0_32, %c0_33] : memref<8x8x8xf32, #tpu.memory_space<vmem>>, vector<1x8x8xf32>
    %68 = vector.shape_cast %67 : vector<1x8x8xf32> to vector<8x8xf32>
    %69 = vector.shape_cast %65 : vector<8x8xf32> to vector<1x8x8xf32>
    tpu.vector_store %arg4[%66, %c0_32, %c0_33], %69 {strides = array<i32>} : memref<8x8x8xf32, #tpu.memory_space<vmem>>, vector<1x8x8xf32>,
    %70 = vector.extract_strided_slice %64 {offsets = [0, 0], sizes = [8, 32], strides = [1, 1]} : vector<8x40xf32> to vector<8x32xf32>
    %c6_i32 = arith.constant 6 : i32
    %cst_34 = arith.constant dense<0.000000e+00> : vector<8x40xf32>
    %71 = tpu.matmul %70, %3, %cst_34 {dimension_numbers = #tpu.dot_dimension_numbers<[1], [0], [0], [1], [0, 0, 1, 1], [], []>} : vector<8x32xf32>, vector<32x40xf32>, vector<8x40xf32> -> vector<8x40xf32>
    %72 = arith.index_cast %c6_i32 : i32 to index
    %c0_35 = arith.constant 0 : index
    %c0_36 = arith.constant 0 : index
    %73 = vector.load %arg1[%72, %c0_35, %c0_36] : memref<8x8x40xf32, #tpu.memory_space<vmem>>, vector<1x8x40xf32>
    %74 = vector.shape_cast %73 : vector<1x8x40xf32> to vector<8x40xf32>
    %75 = arith.addf %71, %74 : vector<8x40xf32>
    %76 = vector.extract_strided_slice %75 {offsets = [0, 32], sizes = [8, 8], strides = [1, 1]} : vector<8x40xf32> to vector<8x8xf32>
    %77 = arith.index_cast %c6_i32 : i32 to index
    %c0_37 = arith.constant 0 : index
    %c0_38 = arith.constant 0 : index
    %78 = vector.load %arg4[%77, %c0_37, %c0_38] : memref<8x8x8xf32, #tpu.memory_space<vmem>>, vector<1x8x8xf32>
    %79 = vector.shape_cast %78 : vector<1x8x8xf32> to vector<8x8xf32>
    %80 = vector.shape_cast %76 : vector<8x8xf32> to vector<1x8x8xf32>
    tpu.vector_store %arg4[%77, %c0_37, %c0_38], %80 {strides = array<i32>} : memref<8x8x8xf32, #tpu.memory_space<vmem>>, vector<1x8x8xf32>,
    %81 = vector.extract_strided_slice %75 {offsets = [0, 0], sizes = [8, 32], strides = [1, 1]} : vector<8x40xf32> to vector<8x32xf32>
    %c7_i32 = arith.constant 7 : i32
    %cst_39 = arith.constant dense<0.000000e+00> : vector<8x40xf32>
    %82 = tpu.matmul %81, %3, %cst_39 {dimension_numbers = #tpu.dot_dimension_numbers<[1], [0], [0], [1], [0, 0, 1, 1], [], []>} : vector<8x32xf32>, vector<32x40xf32>, vector<8x40xf32> -> vector<8x40xf32>
    %83 = arith.index_cast %c7_i32 : i32 to index
    %c0_40 = arith.constant 0 : index
    %c0_41 = arith.constant 0 : index
    %84 = vector.load %arg1[%83, %c0_40, %c0_41] : memref<8x8x40xf32, #tpu.memory_space<vmem>>, vector<1x8x40xf32>
    %85 = vector.shape_cast %84 : vector<1x8x40xf32> to vector<8x40xf32>
    %86 = arith.addf %82, %85 : vector<8x40xf32>
    %87 = vector.extract_strided_slice %86 {offsets = [0, 32], sizes = [8, 8], strides = [1, 1]} : vector<8x40xf32> to vector<8x8xf32>
    %88 = arith.index_cast %c7_i32 : i32 to index
    %c0_42 = arith.constant 0 : index
    %c0_43 = arith.constant 0 : index
    %89 = vector.load %arg4[%88, %c0_42, %c0_43] : memref<8x8x8xf32, #tpu.memory_space<vmem>>, vector<1x8x8xf32>
    %90 = vector.shape_cast %89 : vector<1x8x8xf32> to vector<8x8xf32>
    %91 = vector.shape_cast %87 : vector<8x8xf32> to vector<1x8x8xf32>
    tpu.vector_store %arg4[%88, %c0_42, %c0_43], %91 {strides = array<i32>} : memref<8x8x8xf32, #tpu.memory_space<vmem>>, vector<1x8x8xf32>,
    %92 = vector.extract_strided_slice %86 {offsets = [0, 0], sizes = [8, 32], strides = [1, 1]} : vector<8x40xf32> to vector<8x32xf32>
    %c8_i32 = arith.constant 8 : i32
    %c0_44 = arith.constant 0 : index
    %c0_45 = arith.constant 0 : index
    %c0_46 = arith.constant 0 : index
    %93 = vector.load %arg4[%c0_44, %c0_45, %c0_46] : memref<8x8x8xf32, #tpu.memory_space<vmem>>, vector<8x8x8xf32>
    %cst_47 = arith.constant dense<0xFF800000> : vector<8x8xf32>
    %94 = vector.multi_reduction <maximumf>, %93, %cst_47 [2] : vector<8x8x8xf32> to vector<8x8xf32>
    %95 = vector.shape_cast %94 : vector<8x8xf32> to vector<8x8x1xf32>
    %96 = vector.broadcast %95 : vector<8x8x1xf32> to vector<8x8x8xf32>
    %97 = arith.subf %93, %96 : vector<8x8x8xf32>
    %98 = math.exp %97 : vector<8x8x8xf32>
    %cst_48 = arith.constant dense<0.000000e+00> : vector<8x8xf32>
    %99 = vector.multi_reduction <add>, %98, %cst_48 [2] : vector<8x8x8xf32> to vector<8x8xf32>
    %100 = vector.shape_cast %99 : vector<8x8xf32> to vector<8x8x1xf32>
    %101 = math.log %100 : vector<8x8x1xf32>
    %102 = vector.broadcast %101 : vector<8x8x1xf32> to vector<8x8x8xf32>
    %103 = arith.subf %97, %102 : vector<8x8x8xf32>
    %c0_49 = arith.constant 0 : index
    %c0_50 = arith.constant 0 : index
    %c0_51 = arith.constant 0 : index
    %104 = vector.load %arg4[%c0_49, %c0_50, %c0_51] : memref<8x8x8xf32, #tpu.memory_space<vmem>>, vector<8x8x8xf32>
    tpu.vector_store %arg4[%c0_49, %c0_50, %c0_51], %103 {strides = array<i32>} : memref<8x8x8xf32, #tpu.memory_space<vmem>>, vector<8x8x8xf32>,
    %c0_52 = arith.constant 0 : index
    %c0_53 = arith.constant 0 : index
    %105 = vector.load %arg6[%c0_52, %c0_53] : memref<8x32xf32, #tpu.memory_space<vmem>>, vector<8x32xf32>
    tpu.vector_store %arg6[%c0_52, %c0_53], %92 {strides = array<i32>} : memref<8x32xf32, #tpu.memory_space<vmem>>, vector<8x32xf32>,
    %c1_i32_54 = arith.constant 1 : i32
    %106 = arith.cmpi eq, %arg0, %c1_i32_54 : i32
    %107 = arith.extui %106 : i1 to i32
    %c0_i32_55 = arith.constant 0 : i32
    %108 = arith.cmpi ne, %107, %c0_i32_55 : i32
    scf.if %108 {
      %c0_56 = arith.constant 0 : index
      %c0_57 = arith.constant 0 : index
      %109 = vector.load %arg5[%c0_56, %c0_57] : memref<8x32xf32, #tpu.memory_space<vmem>>, vector<8x32xf32>
      tpu.vector_store %arg5[%c0_56, %c0_57], %92 {strides = array<i32>} : memref<8x32xf32, #tpu.memory_space<vmem>>, vector<8x32xf32>,
    } else {
    }
    return
  }
  func.func @transform_0(%arg0: i32) -> (i32, i32, i32) {
    %c0_i32 = arith.constant 0 : i32
    %c0_i32_0 = arith.constant 0 : i32
    %c0_i32_1 = arith.constant 0 : i32
    return %arg0, %c0_i32, %c0_i32_0 : i32, i32, i32
  }
  func.func @transform_1(%arg0: i32) -> (i32, i32) {
    %c0_i32 = arith.constant 0 : i32
    %c0_i32_0 = arith.constant 0 : i32
    %c0_i32_1 = arith.constant 0 : i32
    return %c0_i32, %c0_i32_0 : i32, i32
  }
  func.func @transform_2(%arg0: i32) -> (i32, i32) {
    %c0_i32 = arith.constant 0 : i32
    %c0_i32_0 = arith.constant 0 : i32
    %c0_i32_1 = arith.constant 0 : i32
    return %c0_i32, %c0_i32_0 : i32, i32
  }
  func.func @transform_3(%arg0: i32) -> (i32, i32, i32) {
    %c0_i32 = arith.constant 0 : i32
    %c0_i32_0 = arith.constant 0 : i32
    %c0_i32_1 = arith.constant 0 : i32
    return %arg0, %c0_i32, %c0_i32_0 : i32, i32, i32
  }
  func.func @transform_4(%arg0: i32) -> (i32, i32) {
    %c0_i32 = arith.constant 0 : i32
    %c0_i32_0 = arith.constant 0 : i32
    %c0_i32_1 = arith.constant 0 : i32
    return %c0_i32, %c0_i32_0 : i32, i32
  }
}

module attributes {stable_mosaic.version = 11 : i64} {
  func.func @x_projection_kernel(%arg0: i32, %arg1: memref<128x16xf32, #tpu.memory_space<vmem>>, %arg2: memref<16x40xf32, #tpu.memory_space<vmem>>, %arg3: memref<1x40xf32, #tpu.memory_space<vmem>>, %arg4: memref<128x40xf32, #tpu.memory_space<vmem>>) attributes {dimension_semantics = [#tpu.dimension_semantics<parallel>], iteration_bounds = array<i64: 1>, scalar_prefetch = 0 : i64, scratch_operands = 0 : i64, tpu.core_type = #tpu.core_type<tc>, window_params = [{transform_indices = @transform_0, window_bounds = array<i64: 128, 16>}, {pipeline_mode = #tpu.pipeline_mode<synchronous>, transform_indices = @transform_1, window_bounds = array<i64: 16, 40>}, {pipeline_mode = #tpu.pipeline_mode<synchronous>, transform_indices = @transform_2, window_bounds = array<i64: 1, 40>}, {transform_indices = @transform_3, window_bounds = array<i64: 128, 40>}]} {
    %c0 = arith.constant 0 : index
    %c0_0 = arith.constant 0 : index
    %0 = vector.load %arg1[%c0, %c0_0] : memref<128x16xf32, #tpu.memory_space<vmem>>, vector<128x16xf32>
    %c0_1 = arith.constant 0 : index
    %c0_2 = arith.constant 0 : index
    %1 = vector.load %arg2[%c0_1, %c0_2] : memref<16x40xf32, #tpu.memory_space<vmem>>, vector<16x40xf32>
    %cst = arith.constant dense<0.000000e+00> : vector<128x40xf32>
    %2 = tpu.matmul %0, %1, %cst {dimension_numbers = #tpu.dot_dimension_numbers<[1], [0], [0], [1], [0, 0, 1, 1], [], []>} : vector<128x16xf32>, vector<16x40xf32>, vector<128x40xf32> -> vector<128x40xf32>
    %c0_3 = arith.constant 0 : index
    %c0_4 = arith.constant 0 : index
    %3 = vector.load %arg3[%c0_3, %c0_4] : memref<1x40xf32, #tpu.memory_space<vmem>>, vector<1x40xf32>
    %4 = vector.broadcast %3 : vector<1x40xf32> to vector<128x40xf32>
    %5 = arith.addf %2, %4 : vector<128x40xf32>
    %c0_5 = arith.constant 0 : index
    %c0_6 = arith.constant 0 : index
    %6 = vector.load %arg4[%c0_5, %c0_6] : memref<128x40xf32, #tpu.memory_space<vmem>>, vector<128x40xf32>
    tpu.vector_store %arg4[%c0_5, %c0_6], %5 {strides = array<i32>} : memref<128x40xf32, #tpu.memory_space<vmem>>, vector<128x40xf32>,
    return
  }
  func.func @transform_0(%arg0: i32) -> (i32, i32) {
    %c0_i32 = arith.constant 0 : i32
    %c0_i32_0 = arith.constant 0 : i32
    return %arg0, %c0_i32 : i32, i32
  }
  func.func @transform_1(%arg0: i32) -> (i32, i32) {
    %c0_i32 = arith.constant 0 : i32
    %c0_i32_0 = arith.constant 0 : i32
    %c0_i32_1 = arith.constant 0 : i32
    return %c0_i32, %c0_i32_0 : i32, i32
  }
  func.func @transform_2(%arg0: i32) -> (i32, i32) {
    %c0_i32 = arith.constant 0 : i32
    %c0_i32_0 = arith.constant 0 : i32
    %c0_i32_1 = arith.constant 0 : i32
    return %c0_i32, %c0_i32_0 : i32, i32
  }
  func.func @transform_3(%arg0: i32) -> (i32, i32) {
    %c0_i32 = arith.constant 0 : i32
    %c0_i32_0 = arith.constant 0 : i32
    return %arg0, %c0_i32 : i32, i32
  }
}

</mosaic_0001>

<bundles_post_ra>
// kernel: rnn_forward_sequence.2
= control target key start
LH: loop header
LB: loop body
LE: loop exit
PB: predicated region body
PF: predicated region fallthrough
CT: control target
= control target key end

     0   :  { %8 = vsyncpa [#allocation3], 0  ;;  %s536_s0 = inlined_call_operand.hbm [shape: f32[128,16], index: 0, kind: input, shape index: {}]   ;;  %s537_s1 = inlined_call_operand.hbm [shape: f32[16,40], index: 1, kind: input, shape index: {}]   ;;  %s538_s2 = inlined_call_operand.vmem [shape: f32[1,40], index: 2, kind: input, shape index: {}]   ;;  %s539_s3 = inlined_call_operand.vmem [shape: f32[128,40], index: 3, kind: output, shape index: {}]  }
   0x1   :  { %9 = vsyncpa [#allocation5], 0  ;;  %s405_s12 = smov [#allocation2]   ;;  %s357_s16 = scalar_lea.hbm %s536_s0, 2048 }
   0x2   :  { %s15_s13 = sshll.u32 %s405_s12, 4  ;;  %p358_p0 = scmp.ne.s32.totalorder %s536_s0, %s357_s16  ;;  %s16_s13 = int_to_ptr.vmem [resolvable:$true] %s15_s13 }
   0x3   :  { %p361_p1 = scmp.lt.u32.totalorder %s357_s16, %s536_s0 }
   0x5   :  { %p363_p2 = pnand %p361_p1, %p358_p0 }
   0x7   :  { %366 = shalt.err (!%p363_p2)
}
   0x8   :  { %s367_s21 = scalar_lea.vmem %s16_s13, 2048  ;;  %p372_p4 = scmp.lt.s32.totalorder %s16_s13, %s16_s13 }
   0x9   :  { %p368_p3 = scmp.ne.s32.totalorder %s16_s13, %s367_s21  ;;  %p373_p5 = scmp.lt.s32.totalorder %s367_s21, %s367_s21 }
   0xb   :  { %p374_p6 = por %p373_p5, %p372_p4 }
   0xd   :  { %p375_p7 = pnand %p374_p6, %p368_p3 }
   0xf   :  { %378 = shalt.err (!%p375_p7)
}
  0x10   :  { %s406_s22 = smov 128   ;;  %s407_s23 = smov 8  }
  0x11   :  { %21 = dma.hbm_to_vmem [thread:$0]  %s536_s0, 2048, %s16_s13, [#allocation3], %s406_s22, %s406_s22, %s407_s23  }
  0x12   :  { %s408_s26 = smov [#allocation4]   ;;  %s379_s30 = scalar_lea.hbm %s537_s1, 256 }
  0x13   :  { %s27_s27 = sshll.u32 %s408_s26, 4  ;;  %p380_p8 = scmp.ne.s32.totalorder %s537_s1, %s379_s30  ;;  %s28_s27 = int_to_ptr.vmem [resolvable:$true] %s27_s27 }
  0x14   :  { %p383_p9 = scmp.lt.u32.totalorder %s379_s30, %s537_s1 }
  0x16   :  { %p385_p10 = pnand %p383_p9, %p380_p8 }
  0x18   :  { %388 = shalt.err (!%p385_p10)
}
  0x19   :  { %s389_s8 = scalar_lea.vmem %s28_s27, 256  ;;  %p394_p12 = scmp.lt.s32.totalorder %s28_s27, %s28_s27 }
  0x1a   :  { %p390_p11 = scmp.ne.s32.totalorder %s28_s27, %s389_s8  ;;  %p395_p13 = scmp.lt.s32.totalorder %s389_s8, %s389_s8 }
  0x1c   :  { %p396_p0 = por %p395_p13, %p394_p12 }
  0x1e   :  { %p397_p1 = pnand %p396_p0, %p390_p11 }
  0x20   :  { %400 = shalt.err (!%p397_p1)
}
  0x21   :  { %33 = dma.hbm_to_vmem [thread:$0]  %s537_s1, 256, %s28_s27, [#allocation5], %s406_s22, %s406_s22, %s407_s23  }
  0x22   :  { %401 = dma.done.wait [#allocation3], 2048  }
  0x23   :  { %402 = vsyncadd [#allocation3], 4294965248 }
  0x24   :  { %403 = dma.done.wait [#allocation5], 256  }
  0x25   :  { %404 = vsyncadd [#allocation5], 4294967040  ;;  %vm67_vm0 = vcmask 130048   ;;  %v58_v0 = vld [vmem:[#allocation4] sm:$0xff]  ;;  %v59_v1 = vld [vmem:[#allocation4 + $0x8] sm:$0xff]  ;;  %vm261_vm1 = vcmask 326656  }
  0x26   :  { %v42_v2 = vld [vmem:[#allocation2] sm:$0xff]  ;;  %v347_v3 = vpack.c.bf16 %v59_v1, %v58_v0  ;;  %v43_v5 = vld [vmem:[#allocation2 + $0x8] sm:$0xff]  ;;  %v44_v7 = vld [vmem:[#allocation2 + $0x10] sm:$0xff] }
  0x27   :  { %323 = vmatprep.mubr.msk.f32.mxu0 %vm67_vm0, %v42_v2  ;;  %v50_v4 = vld [vmem:[#allocation2 + $0x40] sm:$0xff]  ;;  %v51_v6 = vld [vmem:[#allocation2 + $0x48] sm:$0xff]  ;;  %v52_v8 = vld [vmem:[#allocation2 + $0x50] sm:$0xff] }
  0x28   :  { %335 = vmatprep.mubr.msk.f32.mxu1 %vm67_vm0, %v50_v4  ;;  %348 = vmatprep.subr.bf16.mxu0 %v347_v3  ;;  %v45_v9 = vld [vmem:[#allocation2 + $0x18] sm:$0xff]  ;;  %v46_v11 = vld [vmem:[#allocation2 + $0x20] sm:$0xff]  ;;  %v47_v13 = vld [vmem:[#allocation2 + $0x28] sm:$0xff] }
  0x29   :  { %351 = vmatprep.subr.bf16.mxu1 %v347_v3  ;;  %350 = vmatpush3.bf16.msra.mxu0 %v347_v3  ;;  %v53_v10 = vld [vmem:[#allocation2 + $0x58] sm:$0xff]  ;;  %v54_v12 = vld [vmem:[#allocation2 + $0x60] sm:$0xff]  ;;  %v55_v14 = vld [vmem:[#allocation2 + $0x68] sm:$0xff] }
  0x2a   :  { %352 = vmatpush3.bf16.msra.mxu1 %v347_v3  ;;  %v48_v15 = vld [vmem:[#allocation2 + $0x30] sm:$0xff]  ;;  %v49_v17 = vld [vmem:[#allocation2 + $0x38] sm:$0xff]  ;;  %v284_v19 = vld [vmem:[%s538_s2] ss:$0 sm:$0xff] }
  0x2b   :  { %v56_v16 = vld [vmem:[#allocation2 + $0x70] sm:$0xff]  ;;  %v57_v18 = vld [vmem:[#allocation2 + $0x78] sm:$0xff] }
  0x2c   :  { %324 = vmatmul.mubr.msk.f32.vlgmr.msra.gmra.mrb[0].mxu0 %vm67_vm0, %v43_v5 }
  0x2d   :  { %336 = vmatmul.mubr.msk.f32.vlgmr.msra.gmra.mrb[0].mxu1 %vm67_vm0, %v51_v6  ;;  %326 = vmatprep.mubr.msk.f32.mxu0 %vm67_vm0, %v44_v7 }
  0x2e   :  { %338 = vmatprep.mubr.msk.f32.mxu1 %vm67_vm0, %v52_v8 }
  0x30   :  { %327 = vmatmul.mubr.msk.f32.gmra.mrb[2].mxu0 %vm67_vm0, %v45_v9 }
  0x31   :  { %339 = vmatmul.mubr.msk.f32.gmra.mrb[2].mxu1 %vm67_vm0, %v53_v10  ;;  %329 = vmatprep.mubr.msk.f32.mxu0 %vm67_vm0, %v46_v11 }
  0x32   :  { %341 = vmatprep.mubr.msk.f32.mxu1 %vm67_vm0, %v54_v12 }
  0x34   :  { %330 = vmatmul.mubr.msk.f32.gmra.mrb[4].mxu0 %vm67_vm0, %v47_v13 }
  0x35   :  { %342 = vmatmul.mubr.msk.f32.gmra.mrb[4].mxu1 %vm67_vm0, %v55_v14  ;;  %332 = vmatprep.mubr.msk.f32.mxu0 %vm67_vm0, %v48_v15 }
  0x36   :  { %344 = vmatprep.mubr.msk.f32.mxu1 %vm67_vm0, %v56_v16 }
  0x38   :  { %333 = vmatmul.mubr.msk.f32.gmra.mrb[6].mxu0 %vm67_vm0, %v49_v17 }
  0x39   :  { %345 = vmatmul.mubr.msk.f32.gmra.mrb[6].mxu1 %vm67_vm0, %v57_v18 }
  0xff   :  { %v325_v20 = vpop.f32.mrb[0].mxu0 }
 0x100   :  { %v337_v21 = vpop.f32.mrb[0].mxu1  ;;  %v188_v22 = vadd.f32 %v325_v20, %v284_v19  ;;  %v182_v24 = vpop.f32.mrb[1].mxu0 }
 0x101   :  { %v228_v23 = vadd.f32 %v337_v21, %v284_v19  ;;  %v222_v25 = vpop.f32.mrb[1].mxu1  ;;  %v183_v26 = vadd.f32 %v284_v19, %v182_v24 }
 0x102   :  { %v223_v27 = vadd.f32 %v284_v19, %v222_v25  ;;  %263 = vst.msk [vmem:[%s539_s3 + $0x8] sm:$0xff] %vm261_vm1, %v188_v22 }
 0x103   :  { %271 = vst.msk [vmem:[%s539_s3 + $0x48] sm:$0xff] %vm261_vm1, %v228_v23  ;;  %262 = vst.msk [vmem:[%s539_s3] sm:$0xff] %vm261_vm1, %v183_v26  ;;  %v328_v28 = vpop.f32.mrb[2].mxu0 }
 0x104   :  { %270 = vst.msk [vmem:[%s539_s3 + $0x40] sm:$0xff] %vm261_vm1, %v223_v27  ;;  %v340_v29 = vpop.f32.mrb[2].mxu1  ;;  %v198_v30 = vadd.f32 %v328_v28, %v284_v19  ;;  %v192_v32 = vpop.f32.mrb[3].mxu0 }
 0x105   :  { %v238_v31 = vadd.f32 %v340_v29, %v284_v19  ;;  %v232_v33 = vpop.f32.mrb[3].mxu1  ;;  %v193_v34 = vadd.f32 %v284_v19, %v192_v32 }
 0x106   :  { %v233_v35 = vadd.f32 %v284_v19, %v232_v33  ;;  %265 = vst.msk [vmem:[%s539_s3 + $0x18] sm:$0xff] %vm261_vm1, %v198_v30 }
 0x107   :  { %273 = vst.msk [vmem:[%s539_s3 + $0x58] sm:$0xff] %vm261_vm1, %v238_v31  ;;  %264 = vst.msk [vmem:[%s539_s3 + $0x10] sm:$0xff] %vm261_vm1, %v193_v34  ;;  %v331_v36 = vpop.f32.mrb[4].mxu0 }
 0x108   :  { %272 = vst.msk [vmem:[%s539_s3 + $0x50] sm:$0xff] %vm261_vm1, %v233_v35  ;;  %v343_v37 = vpop.f32.mrb[4].mxu1  ;;  %v208_v38 = vadd.f32 %v331_v36, %v284_v19  ;;  %v202_v40 = vpop.f32.mrb[5].mxu0 }
 0x109   :  { %v248_v39 = vadd.f32 %v343_v37, %v284_v19  ;;  %v242_v41 = vpop.f32.mrb[5].mxu1  ;;  %v203_v42 = vadd.f32 %v284_v19, %v202_v40 }
 0x10a   :  { %v243_v43 = vadd.f32 %v284_v19, %v242_v41  ;;  %267 = vst.msk [vmem:[%s539_s3 + $0x28] sm:$0xff] %vm261_vm1, %v208_v38 }
 0x10b   :  { %275 = vst.msk [vmem:[%s539_s3 + $0x68] sm:$0xff] %vm261_vm1, %v248_v39  ;;  %266 = vst.msk [vmem:[%s539_s3 + $0x20] sm:$0xff] %vm261_vm1, %v203_v42  ;;  %v334_v44 = vpop.f32.mrb[6].mxu0 }
 0x10c   :  { %274 = vst.msk [vmem:[%s539_s3 + $0x60] sm:$0xff] %vm261_vm1, %v243_v43  ;;  %v346_v45 = vpop.f32.mrb[6].mxu1  ;;  %v218_v46 = vadd.f32 %v334_v44, %v284_v19  ;;  %v212_v48 = vpop.f32.mrb[7].mxu0 }
 0x10d   :  { %v258_v47 = vadd.f32 %v346_v45, %v284_v19  ;;  %v252_v49 = vpop.f32.mrb[7].mxu1  ;;  %v213_v50 = vadd.f32 %v284_v19, %v212_v48 }
 0x10e   :  { %v253_v51 = vadd.f32 %v284_v19, %v252_v49  ;;  %269 = vst.msk [vmem:[%s539_s3 + $0x38] sm:$0xff] %vm261_vm1, %v218_v46 }
 0x10f   :  { %277 = vst.msk [vmem:[%s539_s3 + $0x78] sm:$0xff] %vm261_vm1, %v258_v47  ;;  %268 = vst.msk [vmem:[%s539_s3 + $0x30] sm:$0xff] %vm261_vm1, %v213_v50 }
 0x110   :  { %276 = vst.msk [vmem:[%s539_s3 + $0x70] sm:$0xff] %vm261_vm1, %v253_v51 }
 0x111   :  { %282 = vsyncpa [#allocation3], 1 }
 0x112   :  { %283 = vsyncpa [#allocation5], 1 }

// kernel: rnn_forward_sequence.3
= control target key start
LH: loop header
LB: loop body
LE: loop exit
PB: predicated region body
PF: predicated region fallthrough
CT: control target
= control target key end

     0   :  { %10 = vsyncpa [#allocation4], 0  ;;  %s1383_s15 = smov 0   ;;  %s1614_s0 = inlined_call_operand.vmem [shape: f32[16,8,40], index: 0, kind: input, shape index: {}]   ;;  %s1615_s1 = inlined_call_operand.vmem [shape: f32[8,32], index: 1, kind: input, shape index: {}]   ;;  %s1616_s2 = inlined_call_operand.vmem [shape: f32[32,40], index: 2, kind: input, shape index: {}]   ;;  %s1617_s3 = inlined_call_operand.vmem [shape: f32[16,8,8], index: 3, kind: output, shape index: {0}]   ;;  %s1618_s4 = inlined_call_operand.hbm [shape: f32[8,32], index: 4, kind: output, shape index: {1}]  }
   0x1 LB: > { %s1389_s16 = sadd.s32 4294967295, %s1351_s15   ;;  %p1055_p0 = scmp.ge.s32.totalorder %s1351_s15, 1  ;;  %s1351_s15 = sphi %s1383_s15, %s16_s15  }
   0x2   : > { %p162_p1 = scmp.lt.s32.totalorder %s1351_s15, 3 }
   0x4   : > { %p163_p2 = pnand %p1055_p0, %p162_p1 }
   0x5   : > { %s1056_s17 = sshll.u32 (!%p163_p2), %s1389_s16, 3  ;;  %p1060_p4 = scmp.ne.s32.totalorder (!%p163_p2), %s1389_s16, 0 }
   0x6   : > { %166 = sbr.rel (%p163_p2) target bundleno = 2207 (0x89f), region = 32  ;;  %p189_p3 = scmp.lt.s32.totalorder (!%p163_p2), %s1056_s17, 15 }
   0xd   : > { %s1620_s17 = smov (!%p189_p3, %s1056_s17), 15  ;;  %203 = sbr.rel (%p1060_p4) target bundleno = 20 (0x14), region = 36 }
   0xe   : > { %s1057_s18 = sshll.u32 %s1620_s17, 3  ;;  %v204_v0 = vld [vmem:[%s1615_s1] sm:$0xff] (!%p1060_p4)  ;;  %vm205_vm0 = vcmask (!%p1060_p4), 261120  }
   0xf   : > { %s1397_s21 = scalar_lea.vmem %s1614_s0, %s1057_s18  ;;  %s1402_s24 = scalar_lea.vmem %s1617_s3, %s1057_s18  ;;  %206 = vst.msk [vmem:[#allocation2] sm:$0xff] (!%p1060_p4), %vm205_vm0, %v204_v0 }
  0x14 PF: > { %v207_v1 = vld [vmem:[%s1616_s2] sm:$0xff]  ;;  %v208_v2 = vld [vmem:[%s1616_s2 + $0x8] sm:$0xff]  ;;  %v209_v3 = vld [vmem:[%s1616_s2 + $0x10] sm:$0xff]  ;;  %v1353_v4 = vmov 0.0|0.0   ;;  %vm1354_vm1 = vmmov 0   ;;  %v1355_v7 = vmov 0.0  }
  0x15   : > { %1216 = vmatprep.subr.bf16.mxu0 %v1353_v4  ;;  %v1418_v5 = vpack.c.bf16 %v208_v2, %v207_v1  ;;  %v210_v6 = vld [vmem:[%s1616_s2 + $0x18] sm:$0xff]  ;;  %1136 = vmatprep.mubr.msk.f32.mxu0 %vm1354_vm1, %v1355_v7  ;;  %vm213_vm2 = vcmask 261120   ;;  %v212_v10 = vld [vmem:[%s1397_s21] sm:$0xff]  ;;  %s1356_s9 = smov 96   ;;  %vm291_vm3 = vcmask 64512   ;;  %v1062_v15 = vld [vmem:[%s1397_s21 + $0x8] sm:$0xff] }
  0x16   : > { %1222 = vmatprep.subr.bf16.mxu1 %v1353_v4  ;;  %1147 = vmatprep.mubr.msk.f32.mxu1 %vm1354_vm1, %v1355_v7  ;;  %v1429_v8 = vpack.c.bf16 %v210_v6, %v209_v3  ;;  %v211_v9 = vld [vmem:[#allocation2] sm:$0xff]  ;;  %v1065_v20 = vld [vmem:[%s1397_s21 + $0x10] sm:$0xff]  ;;  %v1068_v25 = vld [vmem:[%s1397_s21 + $0x18] sm:$0xff]  ;;  %p1083_p5 = scmp.ne.s32.totalorder %s1389_s16, 1 }
  0x17   : > { %1218 = vmatpush3.bf16.msra.mxu0 %v1418_v5  ;;  %1224 = vmatpush3.bf16.msra.mxu1 %v1418_v5  ;;  %v1071_v30 = vld [vmem:[%s1397_s21 + $0x20] sm:$0xff]  ;;  %v1074_v35 = vld [vmem:[%s1397_s21 + $0x28] sm:$0xff]  ;;  %v1077_v40 = vld [vmem:[%s1397_s21 + $0x30] sm:$0xff] }
  0x18   : > { %1219 = vmatprep.subr.bf16.mxu0 %v1353_v4  ;;  %1225 = vmatprep.subr.bf16.mxu1 %v1353_v4  ;;  %v1080_v53 = vld [vmem:[%s1397_s21 + $0x38] sm:$0xff] }
  0x1b   : > { %1221 = vmatpush3.bf16.msra.mxu0 %v1429_v8  ;;  %1227 = vmatpush3.bf16.msra.mxu1 %v1429_v8 }
  0x1c   : > { %1228 = vmatprep.subr.bf16.mxu0 %v1353_v4  ;;  %1234 = vmatprep.subr.bf16.mxu1 %v1353_v4 }
  0x1e   : > { %1137 = vmatmul.mubr.msk.f32.vlgmr.msra.gmra.mrb[0].mxu0 %vm213_vm2, %v211_v9 }
  0x1f   : > { %1230 = vmatpush3.bf16.msra.mxu0 %v1418_v5  ;;  %1158 = vmatprep.mubr.msk.f32.mxu0 %vm1354_vm1, %v1355_v7 }
  0x20   : > { %1231 = vmatprep.subr.bf16.mxu0 %v1353_v4 }
  0x23   : > { %1233 = vmatpush3.bf16.msra.mxu0 %v1429_v8 }
  0x24   : > { %1240 = vmatprep.subr.bf16.mxu0 %v1353_v4 }
  0xf1   : > { %v283_v11 = vpop.f32.mrb[0].mxu0 }
  0xf2   : > { %v284_v12 = vadd.f32 %v283_v11, %v212_v10  ;;  %v1138_v13 = vpop.f32.mrb[1].mxu0 }
  0xf4   : > { %288 = vrot.lane.b32.xlu0 %v284_v12, %s1356_s9  ;;  %1148 = vmatmul.mubr.msk.f32.vlgmr.msra.gmra.mrb[0].mxu1 %vm213_vm2, %v284_v12 }
  0xf5   : > { %1236 = vmatpush3.bf16.msra.mxu1 %v1418_v5  ;;  %1169 = vmatprep.mubr.msk.f32.mxu1 %vm1354_vm1, %v1355_v7 }
  0xf6   : > { %1237 = vmatprep.subr.bf16.mxu1 %v1353_v4 }
  0xf9   : > { %1239 = vmatpush3.bf16.msra.mxu1 %v1429_v8 }
  0xfa   : > { %1246 = vmatprep.subr.bf16.mxu1 %v1353_v4 }
 0x166   : > { %v289_v14 = vpop.permute.xlu0 %288 }
 0x167   : > { %292 = vst.msk [vmem:[%s1402_s24] sm:$0xff] %vm291_vm3, %v289_v14 }
 0x16e   : > { %v853_v44 = vld [vmem:[%s1402_s24] sm:$0xff] }
 0x16f   : > { %v861_v45 = vsel %vm291_vm3, %v853_v44, -inf }
 0x1c7   : > { %v363_v16 = vpop.f32.mrb[0].mxu1 }
 0x1c8   : > { %v364_v17 = vadd.f32 %v1062_v15, %v363_v16  ;;  %v1149_v18 = vpop.f32.mrb[1].mxu1 }
 0x1ca   : > { %368 = vrot.lane.b32.xlu0 %v364_v17, %s1356_s9  ;;  %1159 = vmatmul.mubr.msk.f32.vlgmr.msra.gmra.mrb[2].mxu0 %vm213_vm2, %v364_v17 }
 0x1cb   : > { %1242 = vmatpush3.bf16.msra.mxu0 %v1418_v5  ;;  %1180 = vmatprep.mubr.msk.f32.mxu0 %vm1354_vm1, %v1355_v7 }
 0x1cc   : > { %1243 = vmatprep.subr.bf16.mxu0 %v1353_v4 }
 0x1cf   : > { %1245 = vmatpush3.bf16.msra.mxu0 %v1429_v8 }
 0x1d0   : > { %1252 = vmatprep.subr.bf16.mxu0 %v1353_v4 }
 0x23c   : > { %v369_v19 = vpop.permute.xlu0 %368 }
 0x23d   : > { %1064 = vst.msk [vmem:[%s1402_s24 + $0x8] sm:$0xff] %vm291_vm3, %v369_v19 }
 0x244   : > { %v854_v62 = vld [vmem:[%s1402_s24 + $0x8] sm:$0xff] }
 0x245   : > { %v864_v0 = vsel %vm291_vm3, %v854_v62, -inf }
 0x29d   : > { %v443_v21 = vpop.f32.mrb[2].mxu0 }
 0x29e   : > { %v444_v22 = vadd.f32 %v1065_v20, %v443_v21  ;;  %v1160_v23 = vpop.f32.mrb[3].mxu0 }
 0x2a0   : > { %448 = vrot.lane.b32.xlu1 %v444_v22, %s1356_s9  ;;  %1170 = vmatmul.mubr.msk.f32.vlgmr.msra.gmra.mrb[2].mxu1 %vm213_vm2, %v444_v22 }
 0x2a1   : > { %1248 = vmatpush3.bf16.msra.mxu1 %v1418_v5  ;;  %1191 = vmatprep.mubr.msk.f32.mxu1 %vm1354_vm1, %v1355_v7 }
 0x2a2   : > { %1249 = vmatprep.subr.bf16.mxu1 %v1353_v4 }
 0x2a5   : > { %1251 = vmatpush3.bf16.msra.mxu1 %v1429_v8 }
 0x2a6   : > { %1258 = vmatprep.subr.bf16.mxu1 %v1353_v4 }
 0x312   : > { %v449_v24 = vpop.permute.xlu1 %448 }
 0x313   : > { %1067 = vst.msk [vmem:[%s1402_s24 + $0x10] sm:$0xff] %vm291_vm3, %v449_v24 }
 0x31a   : > { %v855_v46 = vld [vmem:[%s1402_s24 + $0x10] sm:$0xff] }
 0x31b   : > { %v867_v47 = vsel %vm291_vm3, %v855_v46, -inf }
 0x373   : > { %v523_v26 = vpop.f32.mrb[2].mxu1 }
 0x374   : > { %v524_v27 = vadd.f32 %v1068_v25, %v523_v26  ;;  %v1171_v28 = vpop.f32.mrb[3].mxu1 }
 0x376   : > { %528 = vrot.lane.b32.xlu1 %v524_v27, %s1356_s9  ;;  %1181 = vmatmul.mubr.msk.f32.vlgmr.msra.gmra.mrb[4].mxu0 %vm213_vm2, %v524_v27 }
 0x377   : > { %1254 = vmatpush3.bf16.msra.mxu0 %v1418_v5  ;;  %1202 = vmatprep.mubr.msk.f32.mxu0 %vm1354_vm1, %v1355_v7 }
 0x378   : > { %1255 = vmatprep.subr.bf16.mxu0 %v1353_v4 }
 0x37b   : > { %1257 = vmatpush3.bf16.msra.mxu0 %v1429_v8 }
 0x3e8   : > { %v529_v29 = vpop.permute.xlu1 %528 }
 0x3e9   : > { %1070 = vst.msk [vmem:[%s1402_s24 + $0x18] sm:$0xff] %vm291_vm3, %v529_v29 }
 0x3f0   : > { %v856_v48 = vld [vmem:[%s1402_s24 + $0x18] sm:$0xff] }
 0x3f1   : > { %v870_v49 = vsel %vm291_vm3, %v856_v48, -inf }
 0x449   : > { %v603_v31 = vpop.f32.mrb[4].mxu0 }
 0x44a   : > { %v604_v32 = vadd.f32 %v1071_v30, %v603_v31  ;;  %v1182_v33 = vpop.f32.mrb[5].mxu0 }
 0x44c   : > { %608 = vrot.lane.b32.xlu0 %v604_v32, %s1356_s9  ;;  %1192 = vmatmul.mubr.msk.f32.vlgmr.msra.gmra.mrb[4].mxu1 %vm213_vm2, %v604_v32 }
 0x44d   : > { %1260 = vmatpush3.bf16.msra.mxu1 %v1418_v5  ;;  %1213 = vmatprep.mubr.msk.f32.mxu1 %vm1354_vm1, %v1355_v7 }
 0x44e   : > { %1261 = vmatprep.subr.bf16.mxu1 %v1353_v4 }
 0x451   : > { %1263 = vmatpush3.bf16.msra.mxu1 %v1429_v8 }
 0x4be   : > { %v609_v34 = vpop.permute.xlu0 %608 }
 0x4bf   : > { %1073 = vst.msk [vmem:[%s1402_s24 + $0x20] sm:$0xff] %vm291_vm3, %v609_v34 }
 0x4c6   : > { %v857_v1 = vld [vmem:[%s1402_s24 + $0x20] sm:$0xff] }
 0x4c7   : > { %v873_v2 = vsel %vm291_vm3, %v857_v1, -inf }
 0x51f   : > { %v683_v36 = vpop.f32.mrb[4].mxu1 }
 0x520   : > { %v684_v37 = vadd.f32 %v1074_v35, %v683_v36  ;;  %v1193_v38 = vpop.f32.mrb[5].mxu1 }
 0x522   : > { %688 = vrot.lane.b32.xlu1 %v684_v37, %s1356_s9  ;;  %1203 = vmatmul.mubr.msk.f32.vlgmr.msra.gmra.mrb[6].mxu0 %vm213_vm2, %v684_v37 }
 0x594   : > { %v689_v39 = vpop.permute.xlu1 %688 }
 0x595   : > { %1076 = vst.msk [vmem:[%s1402_s24 + $0x28] sm:$0xff] %vm291_vm3, %v689_v39 }
 0x59c   : > { %v858_v50 = vld [vmem:[%s1402_s24 + $0x28] sm:$0xff] }
 0x59d   : > { %v876_v51 = vsel %vm291_vm3, %v858_v50, -inf }
 0x5f5   : > { %v763_v41 = vpop.f32.mrb[6].mxu0 }
 0x5f6   : > { %v764_v42 = vadd.f32 %v1077_v40, %v763_v41  ;;  %v1204_v43 = vpop.f32.mrb[7].mxu0 }
 0x5f8   : > { %768 = vrot.lane.b32.xlu0 %v764_v42, %s1356_s9  ;;  %1214 = vmatmul.mubr.msk.f32.vlgmr.msra.gmra.mrb[6].mxu1 %vm213_vm2, %v764_v42 }
 0x617   : > { %862 = vmax.xlane.f32.xlu0 %v861_v45 }
 0x61b   : > { %868 = vmax.xlane.f32.xlu0 %v867_v47 }
 0x61f   : > { %871 = vmax.xlane.f32.xlu0 %v870_v49 }
 0x623   : > { %877 = vmax.xlane.f32.xlu0 %v876_v51 }
 0x66a   : > { %v769_v52 = vpop.permute.xlu0 %768 }
 0x66b   : > { %1079 = vst.msk [vmem:[%s1402_s24 + $0x30] sm:$0xff] %vm291_vm3, %v769_v52 }
 0x672   : > { %v859_v3 = vld [vmem:[%s1402_s24 + $0x30] sm:$0xff] }
 0x673   : > { %v879_v4 = vsel %vm291_vm3, %v859_v3, -inf }
 0x6a4   : > { %v863_v57 = vpop.xlane.xlu0 %862 }
 0x6a5   : > { %v1523_v58 = vsub.f32 %v853_v44, %v863_v57 }
 0x6a7   : > { %v893_v60 = vmul.f32 1.442695, %v1523_v58 }
 0x6a8   : > { %v869_v59 = vpop.xlane.xlu0 %868 }
 0x6a9   : > { %v1526_v61 = vsub.f32 %v855_v46, %v869_v59  ;;  %1283 = vpow2.f32 %v893_v60 }
 0x6ab   : > { %v897_v63 = vmul.f32 1.442695, %v1526_v61 }
 0x6ac   : > { %v872_v12 = vpop.xlane.xlu0 %871 }
 0x6ad   : > { %1285 = vpow2.f32 %v897_v63  ;;  %v1541_v13 = vsub.f32 %v856_v48, %v872_v12 }
 0x6af   : > { %v899_v17 = vmul.f32 1.442695, %v1541_v13 }
 0x6b0   : > { %v878_v14 = vpop.xlane.xlu0 %877 }
 0x6b1   : > { %v1546_v18 = vsub.f32 %v858_v50, %v878_v14 }
 0x6b3   : > { %v1284_v5 = vpop.eup %1283  ;;  %v903_v22 = vmul.f32 1.442695, %v1546_v18 }
 0x6b4   : > { %v909_v6 = vsel %vm291_vm3, %v1284_v5, 0.0 }
 0x6b7   : > { %v1286_v7 = vpop.eup %1285 }
 0x6b8   : > { %v915_v8 = vsel %vm291_vm3, %v1286_v7, 0.0 }
 0x6cb   : > { %v843_v54 = vpop.f32.mrb[6].mxu1 }
 0x6cc   : > { %v1517_v55 = vadd.f32 %v1080_v53, %v843_v54  ;;  %v1215_v56 = vpop.f32.mrb[7].mxu1 }
 0x6ce   : > { %965 = vst.msk [vmem:[#allocation2] sm:$0xff] %vm213_vm2, %v1517_v55  ;;  %848 = vrot.lane.b32.xlu1 %v1517_v55, %s1356_s9  ;;  %970 = vst.msk [vmem:[#allocation3] sm:$0xff] (!%p1083_p5), %vm213_vm2, %v1517_v55 }
 0x6f2   : > { %865 = vmax.xlane.f32.xlu1 %v864_v0 }
 0x6f6   : > { %874 = vmax.xlane.f32.xlu1 %v873_v2 }
 0x6fa   : > { %880 = vmax.xlane.f32.xlu1 %v879_v4 }
 0x6fe   : > { %910 = vadd.xlane.f32.xlu1 %v909_v6 }
 0x702   : > { %916 = vadd.xlane.f32.xlu1 %v915_v8 }
 0x740   : > { %v849_v9 = vpop.permute.xlu1 %848 }
 0x741   : > { %1082 = vst.msk [vmem:[%s1402_s24 + $0x38] sm:$0xff] %vm291_vm3, %v849_v9 }
 0x748   : > { %v860_v10 = vld [vmem:[%s1402_s24 + $0x38] sm:$0xff] }
 0x749   : > { %v882_v11 = vsel %vm291_vm3, %v860_v10, -inf }
 0x74a   : > { %883 = vmax.xlane.f32.xlu0 %v882_v11 }
 0x77f   : > { %v866_v15 = vpop.xlane.xlu1 %865 }
 0x780   : > { %v1543_v16 = vsub.f32 %v854_v62, %v866_v15 }
 0x782   : > { %v895_v19 = vmul.f32 1.442695, %v1543_v16 }
 0x783   : > { %v875_v20 = vpop.xlane.xlu1 %874 }
 0x784   : > { %1287 = vpow2.f32 %v895_v19  ;;  %v1549_v21 = vsub.f32 %v857_v1, %v875_v20 }
 0x785   : > { %1289 = vpow2.f32 %v899_v17 }
 0x786   : > { %v901_v23 = vmul.f32 1.442695, %v1549_v21 }
 0x787   : > { %v881_v24 = vpop.xlane.xlu1 %880 }
 0x788   : > { %1291 = vpow2.f32 %v901_v23  ;;  %v1553_v25 = vsub.f32 %v859_v3, %v881_v24 }
 0x789   : > { %1293 = vpow2.f32 %v903_v22 }
 0x78a   : > { %v905_v26 = vmul.f32 1.442695, %v1553_v25 }
 0x78b   : > { %v911_v27 = vpop.xlane.xlu1 %910 }
 0x78c   : > { %1295 = vpow2.f32 %v905_v26 }
 0x78d   : > { %1297 = vlog2.f32 %v911_v27 }
 0x78e   : > { %v1288_v28 = vpop.eup %1287 }
 0x78f   : > { %v917_v29 = vpop.xlane.xlu1 %916  ;;  %v912_v30 = vsel %vm291_vm3, %v1288_v28, 0.0  ;;  %v1290_v31 = vpop.eup %1289 }
 0x790   : > { %1299 = vlog2.f32 %v917_v29  ;;  %913 = vadd.xlane.f32.xlu0 %v912_v30  ;;  %v918_v33 = vsel %vm291_vm3, %v1290_v31, 0.0 }
 0x792   : > { %v1292_v32 = vpop.eup %1291 }
 0x793   : > { %v921_v34 = vsel %vm291_vm3, %v1292_v32, 0.0  ;;  %v1294_v35 = vpop.eup %1293 }
 0x794   : > { %919 = vadd.xlane.f32.xlu0 %v918_v33  ;;  %922 = vadd.xlane.f32.xlu1 %v921_v34  ;;  %v924_v38 = vsel %vm291_vm3, %v1294_v35, 0.0 }
 0x796   : > { %v1296_v36 = vpop.eup %1295 }
 0x797   : > { %v1298_v37 = vpop.eup %1297  ;;  %v927_v39 = vsel %vm291_vm3, %v1296_v36, 0.0 }
 0x798   : > { %v934_v40 = vmul.f32 0.6931472, %v1298_v37  ;;  %925 = vadd.xlane.f32.xlu0 %v924_v38  ;;  %928 = vadd.xlane.f32.xlu1 %v927_v39 }
 0x79a   : > { %v1300_v41 = vpop.eup %1299  ;;  %v949_v42 = vsub.f32 %v1523_v58, %v934_v40 }
 0x79b   : > { %v938_v43 = vmul.f32 0.6931472, %v1300_v41 }
 0x79c   : > { %957 = vst.msk [vmem:[%s1402_s24] sm:$0xff] %vm291_vm3, %v949_v42 }
 0x79d   : > { %v951_v44 = vsub.f32 %v1526_v61, %v938_v43 }
 0x79f   : > { %959 = vst.msk [vmem:[%s1402_s24 + $0x10] sm:$0xff] %vm291_vm3, %v951_v44 }
 0x7d7   : > { %v884_v45 = vpop.xlane.xlu0 %883 }
 0x7d8   : > { %v892_v46 = vsub.f32 %v860_v10, %v884_v45 }
 0x7da   : > { %v907_v47 = vmul.f32 1.442695, %v892_v46 }
 0x7dc   : > { %1301 = vpow2.f32 %v907_v47 }
 0x7e6   : > { %v1302_v48 = vpop.eup %1301 }
 0x7e7   : > { %v930_v49 = vsel %vm291_vm3, %v1302_v48, 0.0 }
 0x7e8   : > { %931 = vadd.xlane.f32.xlu0 %v930_v49 }
 0x81d   : > { %v914_v50 = vpop.xlane.xlu0 %913 }
 0x81e   : > { %1303 = vlog2.f32 %v914_v50 }
 0x821   : > { %v920_v51 = vpop.xlane.xlu0 %919  ;;  %v923_v52 = vpop.xlane.xlu1 %922 }
 0x822   : > { %1305 = vlog2.f32 %v920_v51 }
 0x823   : > { %1307 = vlog2.f32 %v923_v52 }
 0x825   : > { %v926_v53 = vpop.xlane.xlu0 %925  ;;  %v929_v54 = vpop.xlane.xlu1 %928 }
 0x826   : > { %1309 = vlog2.f32 %v926_v53 }
 0x827   : > { %1311 = vlog2.f32 %v929_v54 }
 0x828   : > { %v1304_v56 = vpop.eup %1303 }
 0x829   : > { %v936_v57 = vmul.f32 0.6931472, %v1304_v56 }
 0x82b   : > { %v950_v58 = vsub.f32 %v1543_v16, %v936_v57 }
 0x82c   : > { %v1306_v59 = vpop.eup %1305 }
 0x82d   : > { %v1308_v60 = vpop.eup %1307  ;;  %958 = vst.msk [vmem:[%s1402_s24 + $0x8] sm:$0xff] %vm291_vm3, %v950_v58  ;;  %v940_v61 = vmul.f32 0.6931472, %v1306_v59 }
 0x82e   : > { %v942_v62 = vmul.f32 0.6931472, %v1308_v60 }
 0x82f   : > { %v952_v63 = vsub.f32 %v1541_v13, %v940_v61 }
 0x830   : > { %v1310_v0 = vpop.eup %1309  ;;  %v953_v1 = vsub.f32 %v1549_v21, %v942_v62 }
 0x831   : > { %v1312_v2 = vpop.eup %1311  ;;  %960 = vst.msk [vmem:[%s1402_s24 + $0x18] sm:$0xff] %vm291_vm3, %v952_v63  ;;  %v944_v3 = vmul.f32 0.6931472, %v1310_v0 }
 0x832   : > { %961 = vst.msk [vmem:[%s1402_s24 + $0x20] sm:$0xff] %vm291_vm3, %v953_v1  ;;  %v946_v4 = vmul.f32 0.6931472, %v1312_v2 }
 0x833   : > { %v954_v5 = vsub.f32 %v1546_v18, %v944_v3 }
 0x834   : > { %v955_v6 = vsub.f32 %v1553_v25, %v946_v4 }
 0x835   : > { %962 = vst.msk [vmem:[%s1402_s24 + $0x28] sm:$0xff] %vm291_vm3, %v954_v5 }
 0x836   : > { %963 = vst.msk [vmem:[%s1402_s24 + $0x30] sm:$0xff] %vm291_vm3, %v955_v6 }
 0x875   : > { %v932_v7 = vpop.xlane.xlu0 %931 }
 0x876   : > { %1313 = vlog2.f32 %v932_v7 }
 0x87f   : > { %969 = sbr.rel (%p1083_p5) target bundleno = 2182 (0x886), region = 40 }
 0x880   : > { %v1314_v8 = vpop.eup %1313 }
 0x881   : > { %v948_v9 = vmul.f32 0.6931472, %v1314_v8 }
 0x883   : > { %v956_v10 = vsub.f32 %v892_v46, %v948_v9 }
 0x885   : > { %964 = vst.msk [vmem:[%s1402_s24 + $0x38] sm:$0xff] %vm291_vm3, %v956_v10 }
 0x886 PF: > { %p1268_p6 = scmp.eq.s32.totalorder %s1389_s16, 1  ;;  %s1357_s10 = smov [#allocation3]  }
 0x887   : > { %s987_s11 = sshll.u32 %s1357_s10, 4  ;;  %s988_s11 = int_to_ptr.vmem [resolvable:$true] %s987_s11 }
 0x888   : > { %s1315_s12 = scalar_lea.vmem %s988_s11, 128  ;;  %p1322_p10 = scmp.lt.s32.totalorder %s988_s11, %s988_s11 }
 0x889   : > { %p1316_p7 = scmp.ne.s32.totalorder %s988_s11, %s1315_s12  ;;  %p1323_p11 = scmp.lt.s32.totalorder %s1315_s12, %s1315_s12 }
 0x88b   : > { %p1317_p8 = pnand %p1316_p7, %p1268_p6  ;;  %p1324_p12 = por %p1323_p11, %p1322_p10 }
 0x88d   : > { %p1318_p9 = pneg %p1317_p8 }
 0x88f   : > { %p1325_p13 = pnand %p1324_p12, %p1318_p9 }
 0x891   : > { %1328 = shalt.err (!%p1325_p13)
}
 0x892   : > { %s1329_s17 = scalar_lea.hbm %s1618_s4, 128 }
 0x893   : > { %p1330_p0 = scmp.ne.s32.totalorder %s1618_s4, %s1329_s17  ;;  %p1335_p3 = scmp.lt.u32.totalorder %s1329_s17, %s1618_s4 }
 0x895   : > { %p1331_p1 = pnand %p1330_p0, %p1268_p6 }
 0x897   : > { %p1332_p2 = pneg %p1331_p1 }
 0x899   : > { %p1337_p4 = pnand %p1335_p3, %p1332_p2 }
 0x89b   : > { %1340 = shalt.err (!%p1337_p4)
}
 0x89c   : > { %1265 = dma.vmem_to_hbm [thread:$0]  (%p1268_p6), %s988_s11, 128, %s1618_s4, [#allocation4]  }
 0x89d   : > { %1346 = dma.done.wait (%p1268_p6), [#allocation4], 128  }
 0x89e   : > { %1348 = vsyncadd (%p1268_p6), [#allocation4], 4294967168 }
 0x89f PF: > { %s16_s15 = sadd.s32 1, %s1351_s15  }
 0x8a0   : > { %p13_p5 = scmp.ge.s32.totalorder %s16_s15, 4  }
 0x8a2   :  { %15 = sbr.rel (!%p13_p5) target bundleno = 1 (0x1), region = 93 }
 0x8a9   :  { %1008 = vsyncpa [#allocation4], 1 }
 0x8aa   :  { %1010 = vsyncpa [#allocation4 + $0x1], 1 }

</bundles_post_ra>
